<compile_context>
chip_gen: v6e
topology: v6e:2x2x1
jax: 0.10.0
libtpu: 0.0.40
codegen_flags: <defaults>
</compile_context>

<pallas_src>
import jax
import jax.numpy as jnp
from jax.experimental import pallas as pl
from jax.experimental.pallas import tpu as pltpu


def _sigmoid(z):
    # One EUP push (tanh) + cheap VPU mul/add, instead of exp + reciprocal.
    return 0.5 * jnp.tanh(0.5 * z) + 0.5


def _dam_kernel(x_ref, d_ref, wm_ref, sel_ref, w1_ref, avg_ref, gamma_ref,
                beta_ref, w2_ref, o_ref):
    f32 = jnp.float32
    d2 = d_ref[...].astype(f32)          # (BtC, HW) depth_feature (row-packed)
    x2 = x_ref[...].astype(f32)          # (BtC, HW) x              (row-packed)

    # ---- spatial_pool -------------------------------------------------------
    # conv_mask (1x1, C->1) as an MXU matmul with the block-diagonally
    # replicated mask weight: (Bt, BtC) @ (BtC, HW) -> (Bt, HW).
    logits = jnp.dot(wm_ref[...], d2, preferred_element_type=f32)
    # softmax over the spatial axis, one row per batch
    m = jnp.max(logits, axis=-1, keepdims=True)
    e = jnp.exp(logits - m)
    denom = jnp.sum(e, axis=-1, keepdims=True)          # (Bt, 1)
    # denom is only (Bt, 1) scalars; the exact divide is free and keeps tight
    # f32 parity with the reference (pl.reciprocal(approx=True) not needed).
    p = e * (1.0 / denom)                               # (Bt, HW)

    # context[b, c] = sum_s d[b, c, s] * p[b, s] via the MXU:
    # (BtC, HW) . (Bt, HW)^T -> (BtC, Bt); keep the diagonal blocks.
    ctx_full = jax.lax.dot_general(
        d2, p, (((1,), (1,)), ((), ())), preferred_element_type=f32)
    ctx = jnp.sum(ctx_full * sel_ref[...], axis=1, keepdims=True)   # (BtC, 1)
    # NOTE: default f32 matmul precision matched the reference to <2e-5 at
    # these scales; pass precision=jax.lax.Precision.HIGHEST on the two dots
    # above if bit-level parity over very long HW contractions is required.

    # ---- channel_mul_conv: 1x1 conv -> LayerNorm -> ReLU -> 1x1 conv --------
    # All Bt samples go through ONE fused GEMV chain using block-diagonal
    # weights (built once in the wrapper), not Bt serialized N=1 matmuls.
    h = jnp.dot(w1_ref[...], ctx, preferred_element_type=f32)        # (BtP, 1)
    mu = jnp.dot(avg_ref[...], h, preferred_element_type=f32)        # per-batch mean
    var = jnp.dot(avg_ref[...], (h - mu) ** 2,
                  preferred_element_type=f32)                        # per-batch var
    hn = (h - mu) * jax.lax.rsqrt(var + 1e-5) * gamma_ref[...] + beta_ref[...]
    hn = jnp.maximum(hn, 0.0)
    t = jnp.dot(w2_ref[...], hn, preferred_element_type=f32)         # (BtC, 1)
    term = _sigmoid(t)

    # ---- gating (dense, sublane-packed elementwise / EUP work) --------------
    out1 = _sigmoid(d2 * term)               # (BtC, 1) broadcast over lanes
    o_ref[...] = _sigmoid(x2 * out1).astype(o_ref.dtype)


def _tpu_budget():
    """Per-generation (tile_cap_bytes, vmem_cap_bytes, num_tensorcores)."""
    vmem_bytes = None
    try:
        info = pltpu.get_tpu_info()
        v = int(getattr(info, "vmem_capacity_bytes", 0))
        vmem_bytes = v if v > 0 else None
    except Exception:
        vmem_bytes = None
    kind = ""
    try:
        kind = jax.devices()[0].device_kind.lower()
    except Exception:
        pass
    is_v7 = "v7" in kind

    if is_v7 or (vmem_bytes is not None and vmem_bytes <= (80 << 20)):
        # v7x-class: 64 MiB VMEM per TensorCore, 2 TCs -> smaller tiles,
        # never request the whole VMEM (leave headroom for body temporaries).
        return (4 << 20), (52 << 20), 2
    if vmem_bytes is not None and vmem_bytes >= (100 << 20):
        # v5e / v6e: 128 MiB VMEM, single TensorCore -> bigger tiles, fewer
        # grid steps, better DMA / HBM-roofline fraction.
        return (8 << 20), (96 << 20), 1
    # Unknown part: use the conservative (v7x-safe) sizing.
    return (4 << 20), (48 << 20), 1


def _pick_batch_tile(B, C, P, HW, max_block_elems, num_tc, sublane_multiple=8):
    """Batches per grid step.  Must divide B and keep the block sublane-legal
    ((Bt*C) % sublane_multiple == 0 or Bt == B).  Bt is capped so the O(Bt^2)
    block-diagonal constants stay tiny; the multi-step / even-step preference
    only applies on 2-TensorCore (v7x-class) parts."""
    sub = sublane_multiple
    valid = [bt for bt in range(1, B + 1)
             if B % bt == 0 and (bt == B or (bt * C) % sub == 0)]
    # Cap Bt independently of VMEM fill: block-diagonal operands grow O(Bt^2)
    # and their matmuls are (Bt-1)/Bt zeros, so huge Bt buys nothing.
    capped = [bt for bt in valid if bt * max(C, P) <= 256] or [min(valid)]
    fitting = [bt for bt in capped if bt * C * HW <= max_block_elems]
    if not fitting:
        # TODO(synk): add a second grid axis over HW (two-pass / online softmax
        # for spatial_pool) for feature maps whose single-batch slab exceeds
        # the per-step VMEM block budget, instead of erroring out.
        raise ValueError(
            "DAM Pallas kernel: a single batch slab of "
            f"{C}x{HW} f32 ({C * HW * 4} bytes) exceeds the per-step VMEM "
            f"block budget ({max_block_elems * 4} bytes); HW tiling is not "
            "implemented.")
    if num_tc >= 2:
        # Prefer an even number of grid steps so both TensorCores get equal
        # work under dimension_semantics=("parallel",).
        even = [bt for bt in fitting if bt * C >= sub and (B // bt) % 2 == 0]
        if even:
            return max(even)
        multi = [bt for bt in fitting if bt * C >= sub and B // bt >= 2]
        if multi:
            return max(multi)
    return max(fitting)


def dam_forward(x, depth, wm, w1, gamma, beta, w2, stream_bf16=None):
    """DAM forward.  x, depth: (B, C, H, W).  Returns (B, C, H, W) float32.

    Parameter shapes (match the nn.Module):
      wm:    (C, 1)  conv_mask weight      (Conv2d(C, 1, 1x1), no bias)
      w1:    (P, C)  channel_mul_conv[0]   (Conv2d(C, P, 1x1), no bias)
      gamma: (P, 1)  LayerNorm([P,1,1]) weight
      beta:  (P, 1)  LayerNorm([P,1,1]) bias
      w2:    (C, P)  channel_mul_conv[3]   (Conv2d(P, C, 1x1), no bias)

    stream_bf16: None -> keep the caller's dtype for the HBM streams (bf16
    inputs stay bf16, f32 stays f32); True/False forces bf16/f32 streaming.
    Kernel compute is always float32.
    """
    f32 = jnp.float32
    B, C, H, W = x.shape
    P = w1.shape[0]
    HW = H * W

    if stream_bf16 is None:
        stream_dtype = jnp.bfloat16 if x.dtype == jnp.bfloat16 else f32
    else:
        stream_dtype = jnp.bfloat16 if stream_bf16 else f32
    stream_bytes = 2 if stream_dtype == jnp.bfloat16 else 4

    tile_cap_bytes, vmem_cap_bytes, num_tc = _tpu_budget()
    max_block_elems = tile_cap_bytes // 4            # sized by the f32 out tile
    sub = 16 if stream_dtype == jnp.bfloat16 else 8
    Bt = _pick_batch_tile(B, C, P, HW, max_block_elems, num_tc, sub)
    G = B // Bt
    BtC, BtP = Bt * C, Bt * P

    # No pad and no output slice: the last BlockSpec dim is the full HW extent
    # (legal for any HW), so x/depth/out each make exactly one HBM pass.
    xf = x.reshape(B * C, HW).astype(stream_dtype)
    df = depth.reshape(B * C, HW).astype(stream_dtype)

    # Small constant operands (block-diagonally batched weights), built once in
    # the wrapper so the kernel does no iota/tile/reshape work per grid step.
    # Bt is capped, so even double-buffered these stay O(100 KiB).
    eye = jnp.eye(Bt, dtype=f32)
    wm_bd = jnp.kron(eye, wm.reshape(1, C).astype(f32))            # (Bt,  BtC)
    sel = jnp.kron(eye, jnp.ones((C, 1), f32))                     # (BtC, Bt)
    w1_bd = jnp.kron(eye, w1.astype(f32))                          # (BtP, BtC)
    avg = jnp.kron(eye, jnp.full((P, P), 1.0 / P, f32))            # (BtP, BtP)
    w2_bd = jnp.kron(eye, w2.astype(f32))                          # (BtC, BtP)
    gamma_t = jnp.tile(gamma.reshape(P, 1).astype(f32), (Bt, 1))   # (BtP, 1)
    beta_t = jnp.tile(beta.reshape(P, 1).astype(f32), (Bt, 1))     # (BtP, 1)

    in_tile = BtC * HW * stream_bytes
    out_tile = BtC * HW * 4
    const_bytes = 4 * (Bt * BtC + BtC * Bt + BtP * BtC + BtP * BtP
                       + 2 * BtP + BtC * BtP)
    vmem_need = (2 * (2 * in_tile + out_tile)   # double-buffered x/d/out tiles
                 + 4 * out_tile                 # in-body full-tile temporaries
                 + 2 * const_bytes              # (double-buffered) constants
                 + (4 << 20))                   # headroom
    vmem_limit = int(min(vmem_cap_bytes, max(32 << 20, vmem_need)))

    out = pl.pallas_call(
        _dam_kernel,
        out_shape=jax.ShapeDtypeStruct((B * C, HW), f32),
        grid_spec=pltpu.PrefetchScalarGridSpec(
            num_scalar_prefetch=0,
            grid=(G,),
            in_specs=[
                pl.BlockSpec((BtC, HW), lambda g: (g, 0)),    # x (packed rows)
                pl.BlockSpec((BtC, HW), lambda g: (g, 0)),    # depth (packed rows)
                pl.BlockSpec((Bt, BtC), lambda g: (0, 0)),    # conv_mask (block-diag)
                pl.BlockSpec((BtC, Bt), lambda g: (0, 0)),    # context selector
                pl.BlockSpec((BtP, BtC), lambda g: (0, 0)),   # w1 (block-diag)
                pl.BlockSpec((BtP, BtP), lambda g: (0, 0)),   # LN block-averaging mat
                pl.BlockSpec((BtP, 1), lambda g: (0, 0)),     # LN gamma (tiled)
                pl.BlockSpec((BtP, 1), lambda g: (0, 0)),     # LN beta (tiled)
                pl.BlockSpec((BtC, BtP), lambda g: (0, 0)),   # w2 (block-diag)
            ],
            out_specs=pl.BlockSpec((BtC, HW), lambda g: (g, 0)),
        ),
        compiler_params=pltpu.CompilerParams(
            dimension_semantics=("parallel",),
            vmem_limit_bytes=vmem_limit,
        ),
    )(xf, df, wm_bd, sel, w1_bd, avg, gamma_t, beta_t, w2_bd)

    return out.reshape(B, C, H, W)


def dam_reference(x, depth, wm, w1, gamma, beta, w2):
    """Pure-JAX reference matching the PyTorch forward semantics."""
    B, C, H, W = x.shape
    x = x.astype(jnp.float32)
    depth = depth.astype(jnp.float32)
    d = depth.reshape(B, C, H * W)
    logits = jnp.einsum('c,bcs->bs', wm[:, 0], d)
    p = jax.nn.softmax(logits, axis=-1)
    context = jnp.einsum('bcs,bs->bc', d, p)                 # (B, C)
    h = context @ w1.T                                       # (B, P)
    mu = h.mean(-1, keepdims=True)
    var = ((h - mu) ** 2).mean(-1, keepdims=True)
    h = (h - mu) / jnp.sqrt(var + 1e-5) * gamma[:, 0] + beta[:, 0]
    h = jnp.maximum(h, 0.0)
    t = h @ w2.T                                             # (B, C)
    term = jax.nn.sigmoid(t)[:, :, None, None]
    out1 = jax.nn.sigmoid(depth * term)
    return jax.nn.sigmoid(x * out1)


if __name__ == "__main__":
    B, C, H, W = 2, 4, 16, 16        # inplanes = 4
    P = 8                            # planes = 8

    key = jax.random.PRNGKey(0)
    k_x, k_d, k_wm, k_w1, k_w2, k_g, k_b = jax.random.split(key, 7)

    x = jax.random.normal(k_x, (B, C, H, W), dtype=jnp.float32)
    depth = jax.random.normal(k_d, (B, C, H, W), dtype=jnp.float32)

    # Deterministic synthetic parameters (shapes match the nn.Module's __init__).
    wm = 0.2 * jax.random.normal(k_wm, (C, 1), dtype=jnp.float32)          # Conv2d(C,1,1x1)
    w1 = 0.2 * jax.random.normal(k_w1, (P, C), dtype=jnp.float32)          # Conv2d(C,P,1x1)
    gamma = 1.0 + 0.1 * jax.random.normal(k_g, (P, 1), dtype=jnp.float32)  # LayerNorm weight
    beta = 0.1 * jax.random.normal(k_b, (P, 1), dtype=jnp.float32)         # LayerNorm bias
    w2 = 0.2 * jax.random.normal(k_w2, (C, P), dtype=jnp.float32)          # Conv2d(P,C,1x1)

    # --- strict-parity f32 path ---------------------------------------------
    out = jax.block_until_ready(dam_forward(x, depth, wm, w1, gamma, beta, w2))
    ref = dam_reference(x, depth, wm, w1, gamma, beta, w2)
    assert out.shape == (B, C, H, W)
    assert jnp.allclose(out, ref, atol=2e-5, rtol=2e-5), \
        "f32 Pallas output mismatch vs reference"

    # --- reduced-HBM-traffic mode: bf16-streamed inputs, f32 compute ---------
    x_bf = x.astype(jnp.bfloat16)
    d_bf = depth.astype(jnp.bfloat16)
    out_bf = jax.block_until_ready(
        dam_forward(x_bf, d_bf, wm, w1, gamma, beta, w2))
    ref_bf = dam_reference(x_bf, d_bf, wm, w1, gamma, beta, w2)
    assert jnp.allclose(out_bf, ref_bf, atol=1e-4, rtol=1e-4), \
        "bf16-streamed Pallas output mismatch vs reference"

    print("KERNEL_OK")
</pallas_src>

<mosaic_0001>
module attributes {stable_mosaic.version = 11 : i64} {
  func.func @_dam_kernel(%arg0: i32, %arg1: memref<8x256xf32, #tpu.memory_space<vmem>>, %arg2: memref<8x256xf32, #tpu.memory_space<vmem>>, %arg3: memref<2x8xf32, #tpu.memory_space<vmem>>, %arg4: memref<8x2xf32, #tpu.memory_space<vmem>>, %arg5: memref<16x8xf32, #tpu.memory_space<vmem>>, %arg6: memref<16x16xf32, #tpu.memory_space<vmem>>, %arg7: memref<16x1xf32, #tpu.memory_space<vmem>>, %arg8: memref<16x1xf32, #tpu.memory_space<vmem>>, %arg9: memref<8x16xf32, #tpu.memory_space<vmem>>, %arg10: memref<8x256xf32, #tpu.memory_space<vmem>>) attributes {dimension_semantics = [#tpu.dimension_semantics<parallel>], iteration_bounds = array<i64: 1>, scalar_prefetch = 0 : i64, scratch_operands = 0 : i64, tpu.core_type = #tpu.core_type<tc>, window_params = [{transform_indices = @transform_0, window_bounds = array<i64: 8, 256>}, {transform_indices = @transform_1, window_bounds = array<i64: 8, 256>}, {pipeline_mode = #tpu.pipeline_mode<synchronous>, transform_indices = @transform_2, window_bounds = array<i64: 2, 8>}, {pipeline_mode = #tpu.pipeline_mode<synchronous>, transform_indices = @transform_3, window_bounds = array<i64: 8, 2>}, {pipeline_mode = #tpu.pipeline_mode<synchronous>, transform_indices = @transform_4, window_bounds = array<i64: 16, 8>}, {pipeline_mode = #tpu.pipeline_mode<synchronous>, transform_indices = @transform_5, window_bounds = array<i64: 16, 16>}, {pipeline_mode = #tpu.pipeline_mode<synchronous>, transform_indices = @transform_6, window_bounds = array<i64: 16, 1>}, {pipeline_mode = #tpu.pipeline_mode<synchronous>, transform_indices = @transform_7, window_bounds = array<i64: 16, 1>}, {pipeline_mode = #tpu.pipeline_mode<synchronous>, transform_indices = @transform_8, window_bounds = array<i64: 8, 16>}, {transform_indices = @transform_9, window_bounds = array<i64: 8, 256>}]} {
    %c0 = arith.constant 0 : index
    %c0_0 = arith.constant 0 : index
    %0 = vector.load %arg2[%c0, %c0_0] : memref<8x256xf32, #tpu.memory_space<vmem>>, vector<8x256xf32>
    %c0_1 = arith.constant 0 : index
    %c0_2 = arith.constant 0 : index
    %1 = vector.load %arg1[%c0_1, %c0_2] : memref<8x256xf32, #tpu.memory_space<vmem>>, vector<8x256xf32>
    %c0_3 = arith.constant 0 : index
    %c0_4 = arith.constant 0 : index
    %2 = vector.load %arg3[%c0_3, %c0_4] : memref<2x8xf32, #tpu.memory_space<vmem>>, vector<2x8xf32>
    %cst = arith.constant dense<0.000000e+00> : vector<2x256xf32>
    %3 = tpu.matmul %2, %0, %cst {dimension_numbers = #tpu.dot_dimension_numbers<[1], [0], [0], [1], [0, 0, 1, 1], [], []>} : vector<2x8xf32>, vector<8x256xf32>, vector<2x256xf32> -> vector<2x256xf32>
    %cst_5 = arith.constant dense<0xFF800000> : vector<2xf32>
    %4 = vector.multi_reduction <maximumf>, %3, %cst_5 [1] : vector<2x256xf32> to vector<2xf32>
    %5 = vector.shape_cast %4 : vector<2xf32> to vector<2x1xf32>
    %6 = vector.broadcast %5 : vector<2x1xf32> to vector<2x256xf32>
    %7 = arith.subf %3, %6 : vector<2x256xf32>
    %8 = math.exp %7 : vector<2x256xf32>
    %cst_6 = arith.constant dense<0.000000e+00> : vector<2xf32>
    %9 = vector.multi_reduction <add>, %8, %cst_6 [1] : vector<2x256xf32> to vector<2xf32>
    %10 = vector.shape_cast %9 : vector<2xf32> to vector<2x1xf32>
    %cst_7 = arith.constant 1.000000e+00 : f32
    %11 = vector.broadcast %cst_7 : f32 to vector<2x1xf32>
    %12 = arith.divf %11, %10 : vector<2x1xf32>
    %13 = vector.broadcast %12 : vector<2x1xf32> to vector<2x256xf32>
    %14 = arith.mulf %8, %13 : vector<2x256xf32>
    %cst_8 = arith.constant dense<0.000000e+00> : vector<8x2xf32>
    %15 = tpu.matmul %0, %14, %cst_8 {dimension_numbers = #tpu.dot_dimension_numbers<[1], [1], [0], [0], [0, 0, 1, 0], [], []>} : vector<8x256xf32>, vector<2x256xf32>, vector<8x2xf32> -> vector<8x2xf32>
    %c0_9 = arith.constant 0 : index
    %c0_10 = arith.constant 0 : index
    %16 = vector.load %arg4[%c0_9, %c0_10] : memref<8x2xf32, #tpu.memory_space<vmem>>, vector<8x2xf32>
    %17 = arith.mulf %15, %16 : vector<8x2xf32>
    %cst_11 = arith.constant dense<0.000000e+00> : vector<8xf32>
    %18 = vector.multi_reduction <add>, %17, %cst_11 [1] : vector<8x2xf32> to vector<8xf32>
    %19 = vector.shape_cast %18 : vector<8xf32> to vector<8x1xf32>
    %c0_12 = arith.constant 0 : index
    %c0_13 = arith.constant 0 : index
    %20 = vector.load %arg5[%c0_12, %c0_13] : memref<16x8xf32, #tpu.memory_space<vmem>>, vector<16x8xf32>
    %cst_14 = arith.constant dense<0.000000e+00> : vector<16x1xf32>
    %21 = tpu.matmul %20, %19, %cst_14 {dimension_numbers = #tpu.dot_dimension_numbers<[1], [0], [0], [1], [0, 0, 1, 1], [], []>} : vector<16x8xf32>, vector<8x1xf32>, vector<16x1xf32> -> vector<16x1xf32>
    %c0_15 = arith.constant 0 : index
    %c0_16 = arith.constant 0 : index
    %22 = vector.load %arg6[%c0_15, %c0_16] : memref<16x16xf32, #tpu.memory_space<vmem>>, vector<16x16xf32>
    %cst_17 = arith.constant dense<0.000000e+00> : vector<16x1xf32>
    %23 = tpu.matmul %22, %21, %cst_17 {dimension_numbers = #tpu.dot_dimension_numbers<[1], [0], [0], [1], [0, 0, 1, 1], [], []>} : vector<16x16xf32>, vector<16x1xf32>, vector<16x1xf32> -> vector<16x1xf32>
    %c0_18 = arith.constant 0 : index
    %c0_19 = arith.constant 0 : index
    %24 = vector.load %arg6[%c0_18, %c0_19] : memref<16x16xf32, #tpu.memory_space<vmem>>, vector<16x16xf32>
    %25 = arith.subf %21, %23 : vector<16x1xf32>
    %26 = arith.mulf %25, %25 : vector<16x1xf32>
    %cst_20 = arith.constant dense<0.000000e+00> : vector<16x1xf32>
    %27 = tpu.matmul %24, %26, %cst_20 {dimension_numbers = #tpu.dot_dimension_numbers<[1], [0], [0], [1], [0, 0, 1, 1], [], []>} : vector<16x16xf32>, vector<16x1xf32>, vector<16x1xf32> -> vector<16x1xf32>
    %28 = arith.subf %21, %23 : vector<16x1xf32>
    %cst_21 = arith.constant 9.99999974E-6 : f32
    %29 = vector.broadcast %cst_21 : f32 to vector<16x1xf32>
    %30 = arith.addf %27, %29 : vector<16x1xf32>
    %31 = math.rsqrt %30 : vector<16x1xf32>
    %32 = arith.mulf %28, %31 : vector<16x1xf32>
    %c0_22 = arith.constant 0 : index
    %c0_23 = arith.constant 0 : index
    %33 = vector.load %arg7[%c0_22, %c0_23] : memref<16x1xf32, #tpu.memory_space<vmem>>, vector<16x1xf32>
    %34 = arith.mulf %32, %33 : vector<16x1xf32>
    %c0_24 = arith.constant 0 : index
    %c0_25 = arith.constant 0 : index
    %35 = vector.load %arg8[%c0_24, %c0_25] : memref<16x1xf32, #tpu.memory_space<vmem>>, vector<16x1xf32>
    %36 = arith.addf %34, %35 : vector<16x1xf32>
    %cst_26 = arith.constant 0.000000e+00 : f32
    %37 = vector.broadcast %cst_26 : f32 to vector<16x1xf32>
    %38 = arith.maximumf %36, %37 : vector<16x1xf32>
    %c0_27 = arith.constant 0 : index
    %c0_28 = arith.constant 0 : index
    %39 = vector.load %arg9[%c0_27, %c0_28] : memref<8x16xf32, #tpu.memory_space<vmem>>, vector<8x16xf32>
    %cst_29 = arith.constant dense<0.000000e+00> : vector<8x1xf32>
    %40 = tpu.matmul %39, %38, %cst_29 {dimension_numbers = #tpu.dot_dimension_numbers<[1], [0], [0], [1], [0, 0, 1, 1], [], []>} : vector<8x16xf32>, vector<16x1xf32>, vector<8x1xf32> -> vector<8x1xf32>
    %cst_30 = arith.constant 5.000000e-01 : f32
    %41 = vector.broadcast %cst_30 : f32 to vector<8x1xf32>
    %42 = arith.mulf %41, %40 : vector<8x1xf32>
    %43 = math.tanh %42 : vector<8x1xf32>
    %cst_31 = arith.constant 5.000000e-01 : f32
    %44 = vector.broadcast %cst_31 : f32 to vector<8x1xf32>
    %45 = arith.mulf %44, %43 : vector<8x1xf32>
    %cst_32 = arith.constant 5.000000e-01 : f32
    %46 = vector.broadcast %cst_32 : f32 to vector<8x1xf32>
    %47 = arith.addf %45, %46 : vector<8x1xf32>
    %48 = vector.broadcast %47 : vector<8x1xf32> to vector<8x256xf32>
    %49 = arith.mulf %0, %48 : vector<8x256xf32>
    %cst_33 = arith.constant 5.000000e-01 : f32
    %50 = vector.broadcast %cst_33 : f32 to vector<8x256xf32>
    %51 = arith.mulf %50, %49 : vector<8x256xf32>
    %52 = math.tanh %51 : vector<8x256xf32>
    %cst_34 = arith.constant 5.000000e-01 : f32
    %53 = vector.broadcast %cst_34 : f32 to vector<8x256xf32>
    %54 = arith.mulf %53, %52 : vector<8x256xf32>
    %cst_35 = arith.constant 5.000000e-01 : f32
    %55 = vector.broadcast %cst_35 : f32 to vector<8x256xf32>
    %56 = arith.addf %54, %55 : vector<8x256xf32>
    %57 = arith.mulf %1, %56 : vector<8x256xf32>
    %cst_36 = arith.constant 5.000000e-01 : f32
    %58 = vector.broadcast %cst_36 : f32 to vector<8x256xf32>
    %59 = arith.mulf %58, %57 : vector<8x256xf32>
    %60 = math.tanh %59 : vector<8x256xf32>
    %cst_37 = arith.constant 5.000000e-01 : f32
    %61 = vector.broadcast %cst_37 : f32 to vector<8x256xf32>
    %62 = arith.mulf %61, %60 : vector<8x256xf32>
    %cst_38 = arith.constant 5.000000e-01 : f32
    %63 = vector.broadcast %cst_38 : f32 to vector<8x256xf32>
    %64 = arith.addf %62, %63 : vector<8x256xf32>
    %c0_39 = arith.constant 0 : index
    %c0_40 = arith.constant 0 : index
    %65 = vector.load %arg10[%c0_39, %c0_40] : memref<8x256xf32, #tpu.memory_space<vmem>>, vector<8x256xf32>
    tpu.vector_store %arg10[%c0_39, %c0_40], %64 {strides = array<i32>} : memref<8x256xf32, #tpu.memory_space<vmem>>, vector<8x256xf32>,
    return
  }
  func.func @transform_0(%arg0: i32) -> (i32, i32) {
    %c0_i32 = arith.constant 0 : i32
    %c0_i32_0 = arith.constant 0 : i32
    return %arg0, %c0_i32 : i32, i32
  }
  func.func @transform_1(%arg0: i32) -> (i32, i32) {
    %c0_i32 = arith.constant 0 : i32
    %c0_i32_0 = arith.constant 0 : i32
    return %arg0, %c0_i32 : i32, i32
  }
  func.func @transform_2(%arg0: i32) -> (i32, i32) {
    %c0_i32 = arith.constant 0 : i32
    %c0_i32_0 = arith.constant 0 : i32
    %c0_i32_1 = arith.constant 0 : i32
    return %c0_i32, %c0_i32_0 : i32, i32
  }
  func.func @transform_3(%arg0: i32) -> (i32, i32) {
    %c0_i32 = arith.constant 0 : i32
    %c0_i32_0 = arith.constant 0 : i32
    %c0_i32_1 = arith.constant 0 : i32
    return %c0_i32, %c0_i32_0 : i32, i32
  }
  func.func @transform_4(%arg0: i32) -> (i32, i32) {
    %c0_i32 = arith.constant 0 : i32
    %c0_i32_0 = arith.constant 0 : i32
    %c0_i32_1 = arith.constant 0 : i32
    return %c0_i32, %c0_i32_0 : i32, i32
  }
  func.func @transform_5(%arg0: i32) -> (i32, i32) {
    %c0_i32 = arith.constant 0 : i32
    %c0_i32_0 = arith.constant 0 : i32
    %c0_i32_1 = arith.constant 0 : i32
    return %c0_i32, %c0_i32_0 : i32, i32
  }
  func.func @transform_6(%arg0: i32) -> (i32, i32) {
    %c0_i32 = arith.constant 0 : i32
    %c0_i32_0 = arith.constant 0 : i32
    %c0_i32_1 = arith.constant 0 : i32
    return %c0_i32, %c0_i32_0 : i32, i32
  }
  func.func @transform_7(%arg0: i32) -> (i32, i32) {
    %c0_i32 = arith.constant 0 : i32
    %c0_i32_0 = arith.constant 0 : i32
    %c0_i32_1 = arith.constant 0 : i32
    return %c0_i32, %c0_i32_0 : i32, i32
  }
  func.func @transform_8(%arg0: i32) -> (i32, i32) {
    %c0_i32 = arith.constant 0 : i32
    %c0_i32_0 = arith.constant 0 : i32
    %c0_i32_1 = arith.constant 0 : i32
    return %c0_i32, %c0_i32_0 : i32, i32
  }
  func.func @transform_9(%arg0: i32) -> (i32, i32) {
    %c0_i32 = arith.constant 0 : i32
    %c0_i32_0 = arith.constant 0 : i32
    return %arg0, %c0_i32 : i32, i32
  }
}

</mosaic_0001>

<bundles_post_ra>
// kernel: tpu_custom_call.1
= control target key start
LH: loop header
LB: loop body
LE: loop exit
PB: predicated region body
PF: predicated region fallthrough
CT: control target
= control target key end

     0   :  { %vm38_vm0 = vcmask 64512   ;;  %v685_v3 = vmov 0.0   ;;  %s813_s0 = inlined_call_operand.vmem [shape: f32[8,256], index: 0, kind: input, shape index: {}]   ;;  %s814_s1 = inlined_call_operand.vmem [shape: f32[8,256], index: 1, kind: input, shape index: {}]   ;;  %s815_s2 = inlined_call_operand.vmem [shape: f32[2,8], index: 2, kind: input, shape index: {}]   ;;  %s816_s3 = inlined_call_operand.vmem [shape: f32[8,2], index: 3, kind: input, shape index: {}]   ;;  %s817_s4 = inlined_call_operand.vmem [shape: f32[16,8], index: 4, kind: input, shape index: {}]   ;;  %s818_s5 = inlined_call_operand.vmem [shape: f32[16,16], index: 5, kind: input, shape index: {}]   ;;  %s819_s6 = inlined_call_operand.vmem [shape: f32[16,1], index: 6, kind: input, shape index: {}]   ;;  %s820_s7 = inlined_call_operand.vmem [shape: f32[16,1], index: 7, kind: input, shape index: {}]   ;;  %s821_s8 = inlined_call_operand.vmem [shape: f32[8,16], index: 8, kind: input, shape index: {}]   ;;  %s822_s9 = inlined_call_operand.hbm [shape: f32[8,256], index: 9, kind: output, shape index: {}]  }
   0x1   :  { %v742_v0 = vld [vmem:[%s814_s1 + $0x8] sm:$0xff]  ;;  %v747_v1 = vld [vmem:[%s814_s1] sm:$0xff]  ;;  %106 = vmatprep.mubr.f32.mxu0 %v685_v3 }
   0x2   :  { %v37_v2 = vld [vmem:[%s815_s2] sm:$0x3]  ;;  %72 = vmatprep.subr.mxu0 %v742_v0 }
   0x3   :  { %14 = vsyncpa [#allocation3], 0  ;;  %73 = vmatpush1.msra.mxu0 %v747_v1  ;;  %198 = vmatprep.mubr.f32.mxu1 %v742_v0  ;;  %vm113_vm1 = vcmask 1041408   ;;  %v204_v23 = vld [vmem:[%s816_s3] sm:$0xff]  ;;  %vm206_vm2 = vcmask 15360   ;;  %v211_v30 = vld [vmem:[%s817_s4 + $0x8] sm:$0xff] }
   0x4   :  { %589 = vmatmul.mubr.msk.f32.vlgmr.msra.gmra.mxu0 %vm38_vm0, %v37_v2  ;;  %v210_v28 = vld [vmem:[%s817_s4] sm:$0xff]  ;;  %vm295_vm3 = vcmask 130048   ;;  %v294_v34 = vld [vmem:[%s818_s5 + $0x8] sm:$0xff]  ;;  %vm686_vm4 = vmmov 0   ;;  %v687_v60 = vmov 0   ;;  %s688_s10 = smov [#allocation2]  }
   0x5   :  { %613 = vmatprep.mubr.msk.f32.mxu0 %vm38_vm0, %v210_v28  ;;  %v293_v31 = vld [vmem:[%s818_s5] sm:$0xff]  ;;  %v461_v46 = vld [vmem:[%s819_s6 + $0x8] sm:$0xff]  ;;  %641 = vset.pattern.permute.xlu1 %v687_v60  ;;  %s581_s11 = sshll.u32 %s688_s10, 4  ;;  %s582_s11 = int_to_ptr.vmem [resolvable:$true] %s581_s11 }
   0x6   :  { %v465_v49 = vld [vmem:[%s820_s7 + $0x8] sm:$0xff]  ;;  %v460_v50 = vld [vmem:[%s819_s6] sm:$0xff]  ;;  %642 = vset.pattern.permute.xlu0 %v687_v60  ;;  %p668_p1 = scmp.lt.s32.totalorder %s582_s11, %s582_s11 }
   0x7   :  { %v464_v53 = vld [vmem:[%s820_s7] sm:$0xff] }
   0x8   :  { %v470_v59 = vld [vmem:[%s821_s8] sm:$0xff] }
  0xc4   :  { %v108_v4 = vpop.f32.mrf.mxu0 }
  0xc5   :  { %v114_v6 = vsel %vm113_vm1, %v108_v4, -inf }
  0xc6   :  { %v110_v5 = vpop.f32.mrf.mxu0 }
  0xc7   :  { %v115_v7 = vsel %vm113_vm1, %v110_v5, -inf }
  0xc8   :  { %v116_v8 = vmax.f32 %v114_v6, %v115_v7 }
  0xca   :  { %117 = vmax.xlane.f32.xlu0 %v116_v8 }
 0x153   :  { %v118_v9 = vpop.xlane.xlu0 %117 }
 0x154   :  { %v119_v10 = vsub.f32 %v108_v4, %v118_v9  ;;  %v120_v11 = vsub.f32 %v110_v5, %v118_v9 }
 0x156   :  { %v121_v12 = vmul.f32 1.442695, %v119_v10  ;;  %v123_v13 = vmul.f32 1.442695, %v120_v11 }
 0x158   :  { %643 = vpow2.f32 %v121_v12 }
 0x159   :  { %645 = vpow2.f32 %v123_v13  ;;  %v35_v13 = vld [vmem:[%s813_s0] sm:$0xff] }
 0x165   :  { %v644_v14 = vpop.eup %643 }
 0x166   :  { %v646_v15 = vpop.eup %645  ;;  %v125_v16 = vsel %vm113_vm1, %v644_v14, 0.0 }
 0x167   :  { %v126_v17 = vsel %vm113_vm1, %v646_v15, 0.0 }
 0x168   :  { %v127_v18 = vadd.f32 %v126_v17, %v125_v16 }
 0x16a   :  { %128 = vadd.xlane.f32.xlu0 %v127_v18 }
 0x1f3   :  { %v129_v19 = vpop.xlane.xlu0 %128 }
 0x1f4   :  { %647 = vrcp.f32 %v129_v19 }
 0x201   :  { %v648_v20 = vpop.eup %647 }
 0x202   :  { %v133_v21 = vmul.f32 %v648_v20, %v646_v15  ;;  %v132_v22 = vmul.f32 %v648_v20, %v644_v14  ;;  %v36_v15 = vld [vmem:[%s813_s0 + $0x8] sm:$0xff]  ;;  %s663_s0 = scalar_lea.vmem %s582_s11, 256 }
 0x203   :  { %p664_p0 = scmp.ne.s32.totalorder %s582_s11, %s663_s0  ;;  %p669_p2 = scmp.lt.s32.totalorder %s663_s0, %s663_s0 }
 0x204   :  { %164 = vmatprep.subr.mxu1 %v133_v21 }
 0x205   :  { %165 = vmatpush1.xpose.msra.mxu1 %v132_v22  ;;  %p670_p3 = por %p669_p2, %p668_p1 }
 0x207   :  { %p671_p4 = pnand %p670_p3, %p664_p0 }
 0x208   :  { %199 = vmatmul.mubr.f32.vlgmr.msra.gmra.mxu1 %v747_v1 }
 0x209   :  { %620 = vmatprep.mubr.msk.f32.mxu1 %vm295_vm3, %v293_v31 }
 0x2c8   :  { %v200_v24 = vpop.f32.mrf.mxu1 }
 0x2c9   :  { %v205_v25 = vmul.f32 %v204_v23, %v200_v24 }
 0x2ca   :  { %v202_v26 = vpop.f32.mrf.mxu1 }
 0x2cb   :  { %v207_v27 = vsel %vm206_vm2, %v205_v25, 0.0 }
 0x2cc   :  { %208 = vadd.xlane.f32.xlu1 %v207_v27 }
 0x355   :  { %v209_v29 = vpop.xlane.xlu1 %208 }
 0x356   :  { %611 = vmatprep.subr.mxu0 %v209_v29 }
 0x357   :  { %612 = vmatpush3.msra.mxu0 %v209_v29 }
 0x358   :  { %614 = vmatmul.mubr.msk.f32.vlgmr.msra.gmra.mxu0 %vm38_vm0, %v211_v30 }
 0x359   :  { %627 = vmatprep.mubr.msk.f32.mxu0 %vm295_vm3, %v293_v31 }
 0x418   :  { %v615_v32 = vpop.f32.mrf.mxu0 }
 0x419   :  { %616 = vmatprep.subr.mxu1 %v615_v32 }
 0x41a   :  { %v284_v33 = vpop.f32.mrf.mxu0  ;;  %617 = vmatpush3.msra.mxu1 %v615_v32 }
 0x41b   :  { %618 = vmatprep.subr.mxu1 %v284_v33 }
 0x41c   :  { %619 = vmatpush3.msra.mxu1 %v284_v33 }
 0x41d   :  { %621 = vmatmul.mubr.msk.f32.vlgmr.msra.gmra.mxu1 %vm295_vm3, %v294_v34  ;;  %630 = vmatprep.subr.mxu1 %v685_v3 }
 0x41e   :  { %634 = vmatprep.mubr.msk.f32.mxu1 %vm686_vm4, %v685_v3 }
 0x4dd   :  { %v622_v35 = vpop.f32.mrf.mxu1 }
 0x4de   :  { %v378_v36 = vsub.f32 %v615_v32, %v622_v35 }
 0x4df   :  { %v368_v37 = vpop.f32.mrf.mxu1 }
 0x4e0   :  { %v380_v38 = vmul.f32 %v378_v36, %v378_v36  ;;  %v377_v39 = vsub.f32 %v284_v33, %v368_v37 }
 0x4e2   :  { %v379_v40 = vmul.f32 %v377_v39, %v377_v39  ;;  %623 = vmatprep.subr.mxu0 %v380_v38 }
 0x4e3   :  { %624 = vmatpush3.msra.mxu0 %v380_v38 }
 0x4e4   :  { %625 = vmatprep.subr.mxu0 %v379_v40 }
 0x4e5   :  { %626 = vmatpush3.msra.mxu0 %v379_v40 }
 0x4e6   :  { %628 = vmatmul.mubr.msk.f32.vlgmr.msra.gmra.mxu0 %vm295_vm3, %v294_v34 }
 0x5a6   :  { %v629_v41 = vpop.f32.mrf.mxu0 }
 0x5a7   :  { %v453_v42 = vadd.f32 1e-05, %v629_v41 }
 0x5a8   :  { %v447_v43 = vpop.f32.mrf.mxu0 }
 0x5a9   :  { %649 = vrsqrt.f32 %v453_v42  ;;  %v448_v44 = vadd.f32 1e-05, %v447_v43 }
 0x5ab   :  { %651 = vrsqrt.f32 %v448_v44 }
 0x5b6   :  { %v650_v45 = vpop.eup %649 }
 0x5b7   :  { %v459_v47 = vmul.f32 %v650_v45, %v378_v36 }
 0x5b8   :  { %v652_v48 = vpop.eup %651 }
 0x5b9   :  { %v463_v51 = vmul.f32 %v461_v46, %v459_v47  ;;  %v458_v52 = vmul.f32 %v652_v48, %v377_v39 }
 0x5bb   :  { %v467_v54 = vadd.f32 %v465_v49, %v463_v51  ;;  %v462_v55 = vmul.f32 %v460_v50, %v458_v52 }
 0x5bd   :  { %v469_v56 = vmax.f32 %v467_v54, 0.0  ;;  %v466_v57 = vadd.f32 %v464_v53, %v462_v55 }
 0x5bf   :  { %631 = vmatpush3.msra.mxu1 %v469_v56  ;;  %v468_v58 = vmax.f32 %v466_v57, 0.0 }
 0x5c0   :  { %632 = vmatprep.subr.mxu1 %v685_v3 }
 0x5c1   :  { %633 = vmatpush3.msra.mxu1 %v468_v58 }
 0x5c2   :  { %635 = vmatmul.mubr.msk.f32.vlgmr.msra.gmra.mxu1 %vm295_vm3, %v470_v59 }
 0x682   :  { %v540_v61 = vpop.f32.mrf.mxu1 }
 0x683   :  { %v544_v62 = vmul.f32 0.5, %v540_v61 }
 0x684   :  { %v636_v63 = vpop.f32.mrf.mxu1 }
 0x685   :  { %653 = vtanh.f32 %v544_v62 }
 0x692   :  { %v654_v2 = vpop.eup %653 }
 0x693   :  { %v546_v4 = vmul.f32 0.5, %v654_v2 }
 0x695   :  { %v547_v5 = vadd.f32 0.5, %v546_v4 }
 0x697   :  { %550 = vperm.xlu1 %641, %v547_v5  }
 0x712   :  { %v551_v6 = vpop.permute.xlu1 %550 }
 0x713   :  { %v553_v7 = vmul.f32 %v551_v6, %v747_v1  ;;  %v554_v8 = vmul.f32 %v551_v6, %v742_v0 }
 0x715   :  { %v555_v3 = vmul.f32 0.5, %v553_v7  ;;  %v556_v9 = vmul.f32 0.5, %v554_v8 }
 0x717   :  { %655 = vtanh.f32 %v555_v3 }
 0x718   :  { %657 = vtanh.f32 %v556_v9 }
 0x724   :  { %v656_v10 = vpop.eup %655 }
 0x725   :  { %v658_v11 = vpop.eup %657  ;;  %v559_v12 = vmul.f32 0.5, %v656_v10 }
 0x726   :  { %v560_v14 = vmul.f32 0.5, %v658_v11 }
 0x727   :  { %v561_v16 = vadd.f32 0.5, %v559_v12 }
 0x728   :  { %v562_v1 = vadd.f32 0.5, %v560_v14 }
 0x729   :  { %v563_v17 = vmul.f32 %v561_v16, %v35_v13 }
 0x72a   :  { %v564_v0 = vmul.f32 %v562_v1, %v36_v15 }
 0x72b   :  { %v565_v18 = vmul.f32 0.5, %v563_v17 }
 0x72c   :  { %v566_v19 = vmul.f32 0.5, %v564_v0 }
 0x72d   :  { %659 = vtanh.f32 %v565_v18 }
 0x72e   :  { %661 = vtanh.f32 %v566_v19 }
 0x73a   :  { %v660_v20 = vpop.eup %659 }
 0x73b   :  { %v662_v21 = vpop.eup %661  ;;  %v569_v22 = vmul.f32 0.5, %v660_v20 }
 0x73c   :  { %v570_v23 = vmul.f32 0.5, %v662_v21 }
 0x73d   :  { %v571_v24 = vadd.f32 0.5, %v569_v22 }
 0x73e   :  { %v572_v25 = vadd.f32 0.5, %v570_v23 }
 0x73f   :  { %573 = vst [vmem:[#allocation2] sm:$0xff] %v571_v24 }
 0x740   :  { %574 = vst [vmem:[#allocation2 + $0x8] sm:$0xff] %v572_v25 }
 0x741   :  { %674 = shalt.err (!%p671_p4)
}
 0x742   :  { %584 = dma.vmem_to_hbm [thread:$0]  %s582_s11, 256, %s822_s9, [#allocation3]  }
 0x743   :  { %683 = dma.done.wait [#allocation3], 256  }
 0x744   :  { %684 = vsyncadd [#allocation3], 4294967040 }
 0x745   :  { %588 = vsyncpa [#allocation3], 1 }

</bundles_post_ra>
